<compile_context>
chip_gen: v5e
topology: v5e:2x2
jax: 0.10.0
libtpu: 0.0.40
codegen_flags: <defaults>
</compile_context>

<pallas_src>
import functools

import jax
import jax.numpy as jnp
from jax import lax
from jax.experimental import pallas as pl
from jax.experimental.pallas import tpu as pltpu

_LANE = 128
_MAX_TILE_ROWS = 4096            # 4096*128*4 B = 2 MiB f32 per input tile
_SMALL_INPUT_BYTES = 1 << 20     # below this, use the fused XLA path


def _vmem_capacity_bytes():
    try:
        return int(pltpu.get_tpu_info().vmem_capacity_bytes)
    except Exception:
        return 64 << 20          # conservative fallback (v7x physical VMEM)


def _ssd_kernel(x_ref, xr_ref, acc_ref, *, tiles_per_core, tile_rows, valid_rows):
    """Accumulate sum((x - xr)^2) of this tile into the resident (8,128) block."""
    c = pl.program_id(0)         # half-split / core index ('parallel')
    i = pl.program_id(1)         # tile index within the half ('arbitrary')

    @pl.when(i == 0)
    def _init():
        acc_ref[...] = jnp.zeros_like(acc_ref)

    d = x_ref[...].astype(jnp.float32) - xr_ref[...].astype(jnp.float32)

    # Zero out rows past the real data: the partial last tile and the clamped
    # duplicate tile that the second half may re-read.
    logical_tile = c * tiles_per_core + i
    row = logical_tile * tile_rows + lax.broadcasted_iota(jnp.int32, d.shape, 0)
    d = jnp.where(row < valid_rows, d, 0.0)

    dd = d * d
    # Fold the (tile_rows, 128) tile into (8, 128): pure vreg-wise VALU adds.
    acc_ref[...] += dd.reshape(-1, 8, _LANE).sum(axis=0)


def _sum_sq_diff_pallas(x, xr):
    """sum((x - xr)**2) over all elements as an f32 scalar (Pallas streaming)."""
    n = x.size
    if n == 0:
        raise ValueError("GeometryLoss: mse_loss over an empty tensor is undefined.")

    # Stream in the promoted native dtype; up-cast to f32 inside the kernel.
    dt = jnp.promote_types(x.dtype, xr.dtype)
    if (not jnp.issubdtype(dt, jnp.floating)) or jnp.dtype(dt).itemsize > 4:
        dt = jnp.dtype(jnp.float32)
    dt = jnp.dtype(dt)
    itemsize = dt.itemsize
    sub = max(8, 32 // itemsize)             # sublane granularity for this dtype

    x1 = x.reshape(-1).astype(dt)
    xr1 = xr.reshape(-1).astype(dt)
    rows = -(-n // _LANE)                    # ceil(n / 128)
    rows = -(-rows // sub) * sub             # round up to sublane granularity
    pad = rows * _LANE - n
    if pad:
        x1 = jnp.pad(x1, (0, pad))
        xr1 = jnp.pad(xr1, (0, pad))
    x2 = x1.reshape(rows, _LANE)
    xr2 = xr1.reshape(rows, _LANE)

    # Tile sizing from the generation-aware VMEM budget:
    # 2 inputs x 2 pipeline buffers (native dtype) + f32 temporaries headroom.
    vmem_cap = _vmem_capacity_bytes()
    budget = max(16 << 20, vmem_cap // 2)
    per_row_bytes = _LANE * (4 * itemsize + 32)
    rows_by_vmem = max(sub, budget // per_row_bytes)
    tile_rows = int(min(_MAX_TILE_ROWS, rows_by_vmem, rows))
    tile_rows = max(sub, (tile_rows // sub) * sub)

    num_tiles = -(-rows // tile_rows)
    tiles_per_core = -(-num_tiles // 2)

    def in_map(c, i):
        return (jnp.minimum(c * tiles_per_core + i, num_tiles - 1), 0)

    kernel = functools.partial(
        _ssd_kernel,
        tiles_per_core=tiles_per_core,
        tile_rows=tile_rows,
        valid_rows=rows,
    )

    tile_bytes = tile_rows * _LANE * itemsize
    vmem_need = 4 * tile_bytes + 8 * tile_rows * _LANE * 4 + (2 << 20)
    vmem_limit = int(min(int(vmem_cap * 0.9), max(vmem_need, 32 << 20)))

    cost = pl.CostEstimate(
        flops=4 * n,
        transcendentals=0,
        bytes_accessed=2 * n * itemsize + 2 * 8 * _LANE * 4,
    )

    partial = pl.pallas_call(
        kernel,
        out_shape=jax.ShapeDtypeStruct((2, 8, _LANE), jnp.float32),
        grid_spec=pltpu.PrefetchScalarGridSpec(
            num_scalar_prefetch=0,
            grid=(2, tiles_per_core),
            in_specs=[pl.BlockSpec((tile_rows, _LANE), in_map),
                      pl.BlockSpec((tile_rows, _LANE), in_map)],
            out_specs=pl.BlockSpec((None, 8, _LANE), lambda c, i: (c, 0, 0)),
        ),
        compiler_params=pltpu.CompilerParams(
            dimension_semantics=("parallel", "arbitrary"),
            vmem_limit_bytes=vmem_limit,
        ),
        cost_estimate=cost,
    )(x2, xr2)

    # Tiny final reduce + divide in plain JAX (keeps coefs / N out of the kernel).
    return jnp.sum(partial)


def _mse(a, b, *, use_pallas):
    if use_pallas:
        return _sum_sq_diff_pallas(a, b) / a.size
    d = a.astype(jnp.float32) - b.astype(jnp.float32)
    return jnp.mean(d * d)


def geometry_loss(shape, shape_recon, landmark, landmark_recon, color, color_recon,
                  shape_coef=1.0, lm_coef=1.0, color_coef=1.0, *,
                  force_pallas=False):
    """Pallas implementation of GeometryLoss.forward.

    Returns (total_loss, {'shape_loss':..., 'landmark_loss':..., 'color_loss':...}).
    Coefficients are applied outside the kernel, so changing them never recompiles.
    """
    shape, shape_recon = jnp.asarray(shape), jnp.asarray(shape_recon)
    landmark, landmark_recon = jnp.asarray(landmark), jnp.asarray(landmark_recon)
    color, color_recon = jnp.asarray(color), jnp.asarray(color_recon)

    def dispatch(a, b):
        big = a.size * jnp.dtype(a.dtype).itemsize >= _SMALL_INPUT_BYTES
        return _mse(a, b, use_pallas=(force_pallas or big))

    l_shape = dispatch(shape, shape_recon)
    l_lm = dispatch(landmark, landmark_recon)
    l_color = dispatch(color, color_recon)

    total = shape_coef * l_shape + lm_coef * l_lm + color_coef * l_color
    # torch's .detach() on the reported values -> stop_gradient (forward no-op).
    return total, {'shape_loss': lax.stop_gradient(l_shape),
                   'landmark_loss': lax.stop_gradient(l_lm),
                   'color_loss': lax.stop_gradient(l_color)}


def _reference(shape, shape_recon, landmark, landmark_recon, color, color_recon,
               shape_coef=1.0, lm_coef=1.0, color_coef=1.0):
    l_shape = jnp.mean((shape - shape_recon) ** 2)
    l_lm = jnp.mean((landmark - landmark_recon) ** 2)
    l_color = jnp.mean((color - color_recon) ** 2)
    total = shape_coef * l_shape + lm_coef * l_lm + color_coef * l_color
    return total, l_shape, l_lm, l_color


if __name__ == "__main__":
    key = jax.random.PRNGKey(0)
    ks = jax.random.split(key, 6)

    # Small shapes consistent with a geometry/landmark/color reconstruction setup.
    shape        = jax.random.normal(ks[0], (2, 128, 3), dtype=jnp.float32)   # vertex positions
    shape_recon  = jax.random.normal(ks[1], (2, 128, 3), dtype=jnp.float32)
    landmark     = jax.random.normal(ks[2], (2, 68, 2), dtype=jnp.float32)    # 2D landmarks
    landmark_rec = jax.random.normal(ks[3], (2, 68, 2), dtype=jnp.float32)
    color        = jax.random.normal(ks[4], (2, 128, 3), dtype=jnp.float32)   # per-vertex color
    color_recon  = jax.random.normal(ks[5], (2, 128, 3), dtype=jnp.float32)

    coefs = dict(shape_coef=2.0, lm_coef=0.5, color_coef=1.5)

    # force_pallas=True so the Pallas path is exercised even at these toy sizes.
    total, parts = geometry_loss(shape, shape_recon, landmark, landmark_rec,
                                 color, color_recon, force_pallas=True, **coefs)
    total = jax.block_until_ready(total)
    parts = jax.tree_util.tree_map(jax.block_until_ready, parts)

    ref_total, ref_s, ref_l, ref_c = _reference(
        shape, shape_recon, landmark, landmark_rec, color, color_recon, **coefs)

    assert jnp.allclose(total, ref_total, rtol=1e-5, atol=1e-5)
    assert jnp.allclose(parts['shape_loss'], ref_s, rtol=1e-5, atol=1e-5)
    assert jnp.allclose(parts['landmark_loss'], ref_l, rtol=1e-5, atol=1e-5)
    assert jnp.allclose(parts['color_loss'], ref_c, rtol=1e-5, atol=1e-5)

    print("KERNEL_OK")
</pallas_src>

<mosaic_0001>
module attributes {stable_mosaic.version = 11 : i64} {
  func.func @_ssd_kernel(%arg0: i32, %arg1: i32, %arg2: memref<8x128xf32, #tpu.memory_space<vmem>>, %arg3: memref<8x128xf32, #tpu.memory_space<vmem>>, %arg4: memref<1x8x128xf32, #tpu.memory_space<vmem>>) attributes {dimension_semantics = [#tpu.dimension_semantics<parallel>, #tpu.dimension_semantics<arbitrary>], iteration_bounds = array<i64: 2, 1>, scalar_prefetch = 0 : i64, scratch_operands = 0 : i64, tpu.core_type = #tpu.core_type<tc>, window_params = [{transform_indices = @transform_0, window_bounds = array<i64: 8, 128>}, {transform_indices = @transform_1, window_bounds = array<i64: 8, 128>}, {transform_indices = @transform_2, window_bounds = array<i64: 1, 8, 128>}]} {
    %c0_i32 = arith.constant 0 : i32
    %0 = arith.cmpi eq, %arg1, %c0_i32 : i32
    %1 = arith.extui %0 : i1 to i32
    %c0_i32_0 = arith.constant 0 : i32
    %2 = arith.cmpi ne, %1, %c0_i32_0 : i32
    scf.if %2 {
      %cst_12 = arith.constant 0.000000e+00 : f32
      %25 = vector.broadcast %cst_12 : f32 to vector<8x128xf32>
      %c0_13 = arith.constant 0 : index
      %c0_14 = arith.constant 0 : index
      %c0_15 = arith.constant 0 : index
      %26 = vector.load %arg4[%c0_13, %c0_14, %c0_15] : memref<1x8x128xf32, #tpu.memory_space<vmem>>, vector<1x8x128xf32>
      %27 = vector.shape_cast %26 : vector<1x8x128xf32> to vector<8x128xf32>
      %28 = vector.shape_cast %25 : vector<8x128xf32> to vector<1x8x128xf32>
      tpu.vector_store %arg4[%c0_13, %c0_14, %c0_15], %28 {strides = array<i32>} : memref<1x8x128xf32, #tpu.memory_space<vmem>>, vector<1x8x128xf32>,
    } else {
    }
    %c0 = arith.constant 0 : index
    %c0_1 = arith.constant 0 : index
    %3 = vector.load %arg2[%c0, %c0_1] : memref<8x128xf32, #tpu.memory_space<vmem>>, vector<8x128xf32>
    %c0_2 = arith.constant 0 : index
    %c0_3 = arith.constant 0 : index
    %4 = vector.load %arg3[%c0_2, %c0_3] : memref<8x128xf32, #tpu.memory_space<vmem>>, vector<8x128xf32>
    %5 = arith.subf %3, %4 : vector<8x128xf32>
    %c1_i32 = arith.constant 1 : i32
    %6 = arith.muli %arg0, %c1_i32 : i32
    %7 = arith.addi %6, %arg1 : i32
    %c8_i32 = arith.constant 8 : i32
    %8 = arith.muli %7, %c8_i32 : i32
    %9 = tpu.iota {dimensions = array<i32: 0>} : vector<8x128xi32>
    %10 = vector.broadcast %8 : i32 to vector<8x128xi32>
    %11 = arith.addi %10, %9 : vector<8x128xi32>
    %c8_i32_4 = arith.constant 8 : i32
    %12 = vector.broadcast %c8_i32_4 : i32 to vector<8x128xi32>
    %13 = arith.cmpi slt, %11, %12 : vector<8x128xi32>
    %cst = arith.constant 0.000000e+00 : f32
    %14 = vector.broadcast %cst : f32 to vector<8x128xf32>
    %15 = arith.select %13, %5, %14 : vector<8x128xi1>, vector<8x128xf32>
    %16 = arith.mulf %15, %15 : vector<8x128xf32>
    %c0_5 = arith.constant 0 : index
    %c0_6 = arith.constant 0 : index
    %c0_7 = arith.constant 0 : index
    %17 = vector.load %arg4[%c0_5, %c0_6, %c0_7] : memref<1x8x128xf32, #tpu.memory_space<vmem>>, vector<1x8x128xf32>
    %18 = vector.shape_cast %17 : vector<1x8x128xf32> to vector<8x128xf32>
    %19 = vector.shape_cast %16 : vector<8x128xf32> to vector<1x8x128xf32>
    %cst_8 = arith.constant dense<0.000000e+00> : vector<8x128xf32>
    %20 = vector.multi_reduction <add>, %19, %cst_8 [0] : vector<1x8x128xf32> to vector<8x128xf32>
    %21 = arith.addf %18, %20 : vector<8x128xf32>
    %c0_9 = arith.constant 0 : index
    %c0_10 = arith.constant 0 : index
    %c0_11 = arith.constant 0 : index
    %22 = vector.load %arg4[%c0_9, %c0_10, %c0_11] : memref<1x8x128xf32, #tpu.memory_space<vmem>>, vector<1x8x128xf32>
    %23 = vector.shape_cast %22 : vector<1x8x128xf32> to vector<8x128xf32>
    %24 = vector.shape_cast %21 : vector<8x128xf32> to vector<1x8x128xf32>
    tpu.vector_store %arg4[%c0_9, %c0_10, %c0_11], %24 {strides = array<i32>} : memref<1x8x128xf32, #tpu.memory_space<vmem>>, vector<1x8x128xf32>,
    return
  }
  func.func @transform_0(%arg0: i32, %arg1: i32) -> (i32, i32) {
    %c1_i32 = arith.constant 1 : i32
    %0 = arith.muli %arg0, %c1_i32 : i32
    %1 = arith.addi %0, %arg1 : i32
    %c0_i32 = arith.constant 0 : i32
    %2 = arith.minsi %1, %c0_i32 : i32
    %c0_i32_0 = arith.constant 0 : i32
    %c0_i32_1 = arith.constant 0 : i32
    return %2, %c0_i32_0 : i32, i32
  }
  func.func @transform_1(%arg0: i32, %arg1: i32) -> (i32, i32) {
    %c1_i32 = arith.constant 1 : i32
    %0 = arith.muli %arg0, %c1_i32 : i32
    %1 = arith.addi %0, %arg1 : i32
    %c0_i32 = arith.constant 0 : i32
    %2 = arith.minsi %1, %c0_i32 : i32
    %c0_i32_0 = arith.constant 0 : i32
    %c0_i32_1 = arith.constant 0 : i32
    return %2, %c0_i32_0 : i32, i32
  }
  func.func @transform_2(%arg0: i32, %arg1: i32) -> (i32, i32, i32) {
    %c0_i32 = arith.constant 0 : i32
    %c0_i32_0 = arith.constant 0 : i32
    %c0_i32_1 = arith.constant 0 : i32
    return %arg0, %c0_i32, %c0_i32_0 : i32, i32, i32
  }
}

</mosaic_0001>

<bundles_post_ra>
// kernel: tpu_custom_call.1
= control target key start
LH: loop header
LB: loop body
LE: loop exit
PB: predicated region body
PF: predicated region fallthrough
CT: control target
= control target key end

     0   :  { %7 = vsyncpa [#allocation3], 0  ;;  %s837_s0 = inlined_call_operand.hbm [shape: f32[8,128], index: 0, kind: input, shape index: {}]   ;;  %s838_s1 = inlined_call_operand.hbm [shape: f32[8,128], index: 1, kind: input, shape index: {}]   ;;  %s839_s2 = inlined_call_operand.hbm [shape: f32[2,8,128], index: 2, kind: output, shape index: {}]  }
   0x1   :  { %9 = vsyncpa [#allocation3 + $0x1], 0 }
   0x2   :  { %10 = vsyncpa [#allocation6], 0 }
   0x3   :  { %12 = vsyncpa [#allocation6 + $0x1], 0 }
   0x4   :  { %13 = vsyncpa [#allocation4], 0 }
   0x5   :  { %15 = vsyncpa [#allocation4 + $0x1], 0  ;;  %s669_s9 = smov 0   ;;  %s671_s10 = smov 0  }
   0x6   :  { %s673_s11 = smov 0   ;;  %s675_s12 = smov 0  }
   0x7   :  { %s677_s13 = smov 0   ;;  %s679_s14 = smov 0  }
   0x8   :  { %s681_s15 = smov 0   ;;  %s683_s16 = smov 0  }
   0x9 LB: > { %s374_s17 = sadd.s32 4294967295, %s650_s16   ;;  %s375_s18 = sadd.s32 4294967294, %s650_s16   ;;  %s650_s16 = sphi %s683_s16, %s21_s16   ;;  %s646_s15 = sphi %s681_s15, %s851_s15   ;;  %s642_s14 = sphi %s679_s14, %s850_s14   ;;  %s638_s13 = sphi %s677_s13, %s827_s13   ;;  %s634_s12 = sphi %s675_s12, %s849_s12   ;;  %s630_s11 = sphi %s673_s11, %s848_s11   ;;  %s626_s10 = sphi %s671_s10, %s847_s10   ;;  %s622_s9 = sphi %s669_s9, %s846_s9  }
   0xa   : > { %s33_s19 = sadd.s32 1, %s646_s15  ;;  %p619_p1 = scmp.ne.s32.totalorder %s638_s13, 0 }
   0xb   : > { %p35_p0 = scmp.ge.s32.totalorder %s33_s19, 2  ;;  %p54_p2 = scmp.eq.s32.totalorder %s650_s16, 0 }
   0xc   : > { %p59_p3 = scmp.ne.s32.totalorder %s638_s13, %s634_s12  ;;  %p60_p5 = scmp.eq.s32.totalorder %s374_s17, 0 }
   0xd   : > { %s853_s19 = smov (%p35_p0, %s33_s19), 0  ;;  %p715_p4 = por %p619_p1, %p54_p2 }
   0xe   : > { %p719_p6 = por %p60_p5, %p59_p3  ;;  %s101_s22 = ssub.s32 %s646_s15, %s853_s19 }
   0xf   : > { %p102_p7 = scmp.eq.s32.totalorder %s101_s22, 0  ;;  %s104_s23 = sadd.s32 1, %s630_s11 }
  0x10   : > { %p114_p8 = scmp.ne.s32.totalorder %s630_s11, %s626_s10  ;;  %p115_p9 = scmp.eq.s32.totalorder %s374_s17, 1 }
  0x11   : > { %s727_s24 = scalar_select %p102_p7, %s630_s11, %s104_s23  }
  0x12   : > { %p120_p10 = scmp.ne.s32.totalorder %s626_s10, %s622_s9  ;;  %p121_p11 = scmp.eq.s32.totalorder %s375_s18, 1 }
  0x13   : > { %p733_p12 = por %p115_p9, %p114_p8  ;;  %p377_p13 = scmp.ge.s32.totalorder %s650_s16, 2 }
  0x14   : > { %p738_p0 = por %p121_p11, %p120_p10  ;;  %p408_p1 = scmp.lt.s32.totalorder %s650_s16, 2 }
  0x15   : > { %s154_s29 = sshll.u32 %s837_s0, 4  ;;  %s652_s30 = smov [#allocation2]   ;;  %s155_s29 = int_to_ptr.hbm [resolvable:$true] %s154_s29 }
  0x16   : > { %s156_s3 = sshll.u32 %s652_s30, 4  ;;  %p748_p2 = pnand %p408_p1, %p715_p4  ;;  %s157_s3 = int_to_ptr.vmem [resolvable:$true] %s156_s3 }
  0x17   : > { %p382_p3 = scmp.ge.s32.totalorder %s650_s16, 1  ;;  %p183_p5 = scmp.lt.s32.totalorder %s650_s16, 3 }
  0x18   : > { %s483_s5 = sshra.s32 %s155_s29, 4  ;;  %p487_p8 = pneg %p748_p2  ;;  %s484_s5 = int_to_ptr.hbm [resolvable:$true] %s483_s5 }
  0x19   : > { %s485_s6 = scalar_lea.hbm %s484_s5, 8  ;;  %s490_s12 = scalar_lea.hbm %s837_s0, 8 }
  0x1a   : > { %p486_p7 = scmp.ne.s32.totalorder %s484_s5, %s485_s6  ;;  %p492_p4 = scmp.lt.s32.totalorder %s490_s12, %s485_s6 }
  0x1c   : > { %p488_p9 = pnand %p487_p8, %p486_p7 }
  0x1e   : > { %p489_p10 = pneg %p488_p9 }
  0x20   : > { %p494_p11 = pnand %p492_p4, %p489_p10 }
  0x22   : > { %497 = shalt.err (!%p494_p11)
}
  0x23   : > { %400 = dma.hbm_to_vmem [thread:$0]  (!%p748_p2), %s155_s29, 128, %s157_s3, [#allocation3]  }
  0x24   : > { %p768_p1 = pnand %p382_p3, %p183_p5  ;;  %s176_s22 = sshll.u32 %s838_s1, 4  ;;  %s177_s22 = int_to_ptr.hbm [resolvable:$true] %s176_s22 }
  0x25   : > { %s653_s23 = smov [#allocation5]   ;;  %s513_s28 = sshra.s32 %s177_s22, 4  ;;  %s514_s28 = int_to_ptr.hbm [resolvable:$true] %s513_s28 }
  0x26   : > { %s178_s27 = sshll.u32 %s653_s23, 4  ;;  %s515_s30 = scalar_lea.hbm %s514_s28, 8  ;;  %s179_s27 = int_to_ptr.vmem [resolvable:$true] %s178_s27 }
  0x27   : > { %p516_p7 = scmp.ne.s32.totalorder %s514_s28, %s515_s30  ;;  %s520_s5 = scalar_lea.hbm %s838_s1, 8 }
  0x28   : > { %p522_p3 = scmp.lt.s32.totalorder %s520_s5, %s515_s30 }
  0x29   : > { %p518_p9 = pnand %p516_p7, %p487_p8 }
  0x2b   : > { %p519_p10 = pneg %p518_p9 }
  0x2d   : > { %p524_p5 = pnand %p522_p3, %p519_p10 }
  0x2f   : > { %527 = shalt.err (!%p524_p5)
}
  0x30   : > { %403 = dma.hbm_to_vmem [thread:$0]  (!%p748_p2), %s177_s22, 128, %s179_s27, [#allocation6]  }
  0x31   : > { %187 = sbr.rel (%p768_p1) target bundleno = 73 (0x49), region = 28  ;;  %s189_s6 = sand.u32 (!%p768_p1), 1, %s638_s13  }
  0x32   : > { %s383_s7 = sshll.u32 (!%p768_p1), %s189_s6, 3  ;;  %s190_s8 = scalar_lea.sflag (!%p768_p1), [#allocation3], %s189_s6 }
  0x33   : > { %s193_s12 = scalar_lea.vmem (!%p768_p1), [#allocation2], %s383_s7 }
  0x36   : > { %608 = dma.done.wait (%p719_p6), %s190_s8, 128  }
  0x37   : > { %610 = vsyncadd (%p719_p6), %s190_s8, 4294967168  ;;  %s200_s18 = scalar_lea.sflag [#allocation6], %s189_s6  ;;  %s203_s20 = scalar_lea.vmem [#allocation5], %s383_s7 }
  0x38   : > { %612 = dma.done.wait (%p719_p6), %s200_s18, 128  }
  0x39   : > { %614 = vsyncadd (%p719_p6), %s200_s18, 4294967168  ;;  %s386_s4 = sshll.u32 %s642_s14, 3  ;;  %v246_v0 = vlaneseq  ;;  %s227_s17 = sand.u32 1, %s626_s10   ;;  %v241_v4 = vld [vmem:[%s193_s12] sm:$0xff]  ;;  %v242_v5 = vld [vmem:[%s203_s20] sm:$0xff] }
  0x3a   : > { %v248_v1 = vstv %s386_s4  ;;  %s385_s22 = sshll.u32 %s227_s17, 3  ;;  %s268_s28 = scalar_lea.hbm %s839_s2, %s386_s4  ;;  %v243_v6 = vsub.f32 %v241_v4, %v242_v5 }
  0x3b   : > { %v247_v2 = vshrl.u32 %v246_v0, 7  ;;  %s229_s21 = scalar_lea.vmem [#allocation7], %s385_s22  ;;  %s272_s29 = sshll.u32 %s268_s28, 4  ;;  %s273_s29 = int_to_ptr.hbm [resolvable:$true] %s272_s29 }
  0x3c   : > { %s270_s30 = sshll.u32 %s229_s21, 4  ;;  %s258_s14 = scalar_lea.sflag [#allocation4], %s227_s17  ;;  %s271_s30 = int_to_ptr.vmem [resolvable:$true] %s270_s30 }
  0x3d   : > { %v249_v3 = vadd.s32 %v248_v1, %v247_v2  ;;  %s557_s3 = sshra.s32 %s273_s29, 4  ;;  %s563_s8 = scalar_lea.hbm %s839_s2, 16  ;;  %s558_s3 = int_to_ptr.hbm [resolvable:$true] %s557_s3 }
  0x3e   : > { %s559_s5 = scalar_lea.hbm %s558_s3, 8  ;;  %p564_p4 = scmp.lt.s32.totalorder %s558_s3, %s839_s2 }
  0x3f   : > { %vm250_vm0 = vcmp.lt.s32.totalorder %v249_v3, 8  ;;  %p560_p6 = scmp.ne.s32.totalorder %s558_s3, %s559_s5  ;;  %p565_p11 = scmp.lt.s32.totalorder %s563_s8, %s559_s5 }
  0x40   : > { %v251_v7 = vsel %vm250_vm0, %v243_v6, 0.0 }
  0x41   : > { %v252_v8 = vmul.f32 %v251_v7, %v251_v7  ;;  %p561_p2 = pnand %p560_p6, %p733_p12  ;;  %p566_p1 = por %p565_p11, %p564_p4 }
  0x43   : > { %256 = vst [vmem:[%s229_s21] sm:$0xff] %v252_v8  ;;  %p562_p8 = pneg %p561_p2 }
  0x45   : > { %p567_p7 = pnand %p566_p1, %p562_p8 }
  0x47   : > { %570 = shalt.err (!%p567_p7)
}
  0x48   : > { %395 = dma.vmem_to_hbm [thread:$0]  (%p733_p12), %s271_s30, 128, %s273_s29, %s258_s14  }
  0x49 PF: > { %s284_s20 = sand.u32 1, %s622_s9   ;;  %p405_p9 = pnand %p377_p13, %p738_p0 }
  0x4a   : > { %s285_s4 = scalar_lea.sflag [#allocation4], %s284_s20 }
  0x4b   : > { %p406_p10 = pneg %p405_p9 }
  0x4d   : > { %616 = dma.done.wait (%p406_p10), %s285_s4, 128  }
  0x4e   : > { %618 = vsyncadd (%p406_p10), %s285_s4, 4294967168  ;;  %s21_s16 = sadd.s32 1, %s650_s16   ;;  %s846_s9 = smov %s626_s10 }
  0x4f   : > { %p18_p3 = scmp.ge.s32.totalorder %s21_s16, 4   ;;  %s847_s10 = smov %s630_s11 }
  0x50   : > { %s848_s11 = smov %s727_s24  ;;  %s849_s12 = smov %s638_s13 }
  0x51   : > { %s827_s13 = smov 0   ;;  %s850_s14 = smov %s646_s15 }
  0x52   : > { %s851_s15 = smov %s853_s19  ;;  %20 = sbr.rel (!%p18_p3) target bundleno = 9 (0x9), region = 90 }
  0x57   :  { %291 = vsyncpa [#allocation3], 1 }
  0x58   :  { %293 = vsyncpa [#allocation3 + $0x1], 1 }
  0x59   :  { %294 = vsyncpa [#allocation6], 1 }
  0x5a   :  { %296 = vsyncpa [#allocation6 + $0x1], 1 }
  0x5b   :  { %297 = vsyncpa [#allocation4], 1 }
  0x5c   :  { %299 = vsyncpa [#allocation4 + $0x1], 1 }

</bundles_post_ra>
